<compile_context>
chip_gen: v7x
topology: tpu7x:2x2x1
jax: 0.10.0
libtpu: 0.0.40
codegen_flags: <defaults>
</compile_context>

<pallas_src>
import functools
import math

import jax
import jax.numpy as jnp
import numpy as np
from jax.experimental import pallas as pl
from jax.experimental.pallas import tpu as pltpu


def conv_block_kernel(x_ref, w_ref, b_ref, o_ref, acc_ref, *,
                      L, K, P, Lout, NB, pad_l):
    """One grid step = NB batch elements.

    x_ref:   (NB*L, Cin)      bf16 activation slab (batch-major, length-minor rows)
    w_ref:   (K, Cin, Cout)   bf16 conv weights, tap-major, VMEM-resident
    b_ref:   (1, Cout)        f32 conv bias, VMEM-resident
    o_ref:   (NB*Lout, Cout)  f32 pooled output block
    acc_ref: (NB*L, Cout)     f32 VMEM scratch for the pre-pool activation (P > 1)
    """
    R = NB * L
    Cout = o_ref.shape[-1]

    x = x_ref[...]                                   # single unshifted load of the slab

    # Row position within its batch element (computed once, reused by all taps).
    l_mod = jax.lax.broadcasted_iota(jnp.int32, (R, 1), 0) % L

    # Conv1d('same', stride=1): out[l] = sum_k x[l + k - pad_l] @ w[k].
    # Multiply the unshifted slab per tap (MXU), rotate the f32 result on the XLU,
    # and mask rows whose source index falls outside the batch element (this is
    # exactly the zero 'same' padding; it also kills wrap-around across batch
    # elements and into zero batch-padding rows).
    acc = jnp.zeros((R, Cout), jnp.float32)
    for k in range(K):
        s = k - pad_l                                # source shift for this tap
        y = jnp.dot(x, w_ref[k], preferred_element_type=jnp.float32)
        if s == 0:
            acc = acc + y
        else:
            y = pltpu.roll(y, (-s) % R, 0)           # y'[l] = y[(l + s) mod R]
            valid = (l_mod >= -s) if s < 0 else (l_mod < L - s)
            acc = acc + jnp.where(valid, y, 0.0)

    # Bias + ReLU in f32 on the VPU.
    acc = jnp.maximum(acc + b_ref[...], 0.0)

    # --- MaxPool1d(kernel_size=P, stride=P) ---
    if P == 1:
        o_ref[...] = acc.astype(o_ref.dtype)         # pooling is identity
    else:
        acc_ref[...] = acc                           # one dense VMEM store
        if L % P == 0:
            # Phase-p rows {p, p+P, ...} via sublane-strided loads, elementwise max
            # across the P phases, then a single wide output store.
            pooled = acc_ref[pl.ds(0, NB * Lout, P), :]
            for p in range(1, P):
                pooled = jnp.maximum(pooled, acc_ref[pl.ds(p, NB * Lout, P), :])
            o_ref[...] = pooled.astype(o_ref.dtype)
        else:
            # Rare fallback (L % P != 0): the flat strided pattern would cross
            # batch-element boundaries, so pool each element separately (static NB).
            for n in range(NB):
                pooled = acc_ref[pl.ds(n * L, Lout, P), :]
                for p in range(1, P):
                    pooled = jnp.maximum(pooled,
                                         acc_ref[pl.ds(n * L + p, Lout, P), :])
                o_ref[pl.ds(n * Lout, Lout), :] = pooled.astype(o_ref.dtype)

    # TODO(synk): Dropout is modeled in eval mode (identity); training parity would
    # need an in-kernel PRNG mask (pltpu.prng_seed / pltpu.prng_random_bits).


def _cdiv(a, b):
    return -(-a // b)


def _lcm(a, b):
    return a * b // math.gcd(a, b)


def conv_block_forward(x, w, b, *, pool_size, batch_block=8,
                       compute_dtype=jnp.bfloat16):
    """x: (N, Cin, L) NCL (PyTorch Conv1d layout); w: (Cout, Cin, K); b: (Cout,).

    Returns (N, Cout, L // pool_size), matching the PyTorch module output.
    """
    N, Cin, L = x.shape
    Cout, _, K = w.shape
    P = pool_size
    Lout = L // P
    assert Lout >= 1, "pool_size larger than sequence length"
    pad_l = (K - 1) // 2          # PyTorch 'same': left = (K-1)//2, right = K-1-left

    # ---- Batch tile (NB) selection -------------------------------------------
    # Alignment: NB*L multiple of 16 (bf16 sublane pack / input block rows) and
    # NB*Lout multiple of 8 (f32 output block rows).
    align = _lcm(16 // math.gcd(L, 16), 8 // math.gcd(Lout, 8))
    NB = max(align, (min(batch_block, N) // align) * align)
    # Prefer >= 2 grid steps: the "parallel" batch axis can shard across v7x's two
    # TensorCores and the BlockSpec pipeline has DMA/compute to overlap.
    while NB > align and _cdiv(N, NB) < 2:
        NB -= align

    # Per-generation VMEM sizing (v7x: 64 MiB physical; v5e/v6e: 128 MiB).
    try:
        vmem_cap = pltpu.get_tpu_info().vmem_capacity_bytes
    except Exception:
        vmem_cap = 64 * 1024 * 1024
    vmem_limit = min((vmem_cap * 3) // 4, 96 * 1024 * 1024)

    def step_bytes(nb):
        return (2 * nb * L * Cin * 2            # x block, double-buffered bf16
                + 2 * nb * Lout * Cout * 4      # output block, double-buffered f32
                + nb * L * Cout * 4             # pool scratch (f32)
                + nb * L * Cout * 4             # acc live value (worst case spilled)
                + 2 * (K * Cin * Cout * 2 + Cout * 4))   # weights + bias

    while NB > align and step_bytes(NB) > (vmem_limit * 3) // 4:
        NB -= align

    N_pad = _cdiv(N, NB) * NB
    grid = (N_pad // NB,)

    # ---- Single fused producer pass (no halo padding materialized in HBM) ----
    x_nlc = jnp.transpose(x, (0, 2, 1)).astype(compute_dtype)     # (N, L, Cin)
    if N_pad != N:
        x_nlc = jnp.pad(x_nlc, ((0, N_pad - N), (0, 0), (0, 0)))
    x_flat = x_nlc.reshape(N_pad * L, Cin)                        # free reshape
    w_kic = jnp.transpose(w, (2, 1, 0)).astype(compute_dtype)     # (K, Cin, Cout)
    b2 = b.reshape(1, Cout).astype(jnp.float32)

    kernel = functools.partial(conv_block_kernel,
                               L=L, K=K, P=P, Lout=Lout, NB=NB, pad_l=pad_l)

    scratch = (pltpu.VMEM((NB * L, Cout), jnp.float32) if P > 1
               else pltpu.VMEM((8, 128), jnp.float32))            # unused when P == 1

    flops = 2 * N_pad * L * K * Cin * Cout
    bytes_accessed = (N_pad * L * Cin * 2                          # activations (bf16)
                      + K * Cin * Cout * 2 + Cout * 4              # weights + bias
                      + N_pad * Lout * Cout * 4)                   # pooled output (f32)

    out_flat = pl.pallas_call(
        kernel,
        out_shape=jax.ShapeDtypeStruct((N_pad * Lout, Cout), jnp.float32),
        grid_spec=pltpu.PrefetchScalarGridSpec(
            num_scalar_prefetch=0,
            grid=grid,
            in_specs=[
                pl.BlockSpec((NB * L, Cin), lambda n: (n, 0)),
                pl.BlockSpec((K, Cin, Cout), lambda n: (0, 0, 0)),  # resident weights
                pl.BlockSpec((1, Cout), lambda n: (0, 0)),          # resident bias
            ],
            out_specs=pl.BlockSpec((NB * Lout, Cout), lambda n: (n, 0)),
            scratch_shapes=[scratch],
        ),
        compiler_params=pltpu.CompilerParams(
            dimension_semantics=("parallel",),
            vmem_limit_bytes=int(vmem_limit)),
        cost_estimate=pl.CostEstimate(flops=flops, transcendentals=0,
                                      bytes_accessed=bytes_accessed),
    )(x_flat, w_kic, b2)

    # Cheap consumer pass on the pooled (P-times smaller) tensor.
    out = out_flat.reshape(N_pad, Lout, Cout)[:N]                  # (N, Lout, Cout)
    return jnp.transpose(out, (0, 2, 1))                           # (N, Cout, Lout)


def ref_conv_block(x, w, b, pool_size, compute_dtype=jnp.bfloat16):
    """Pure-JAX reference mirroring PyTorch semantics (eval-mode dropout).

    Inputs are quantized to `compute_dtype` like the kernel wrapper so the
    comparison isolates kernel correctness (bf16 products accumulate in f32).
    """
    N, Cin, L = x.shape
    Cout, _, K = w.shape
    xq = x.astype(compute_dtype).astype(jnp.float32)
    wq = w.astype(compute_dtype).astype(jnp.float32)
    pad_l = (K - 1) // 2
    pad_r = (K - 1) - pad_l
    xp = jnp.pad(xq, ((0, 0), (0, 0), (pad_l, pad_r)))
    out = jnp.zeros((N, Cout, L), jnp.float32)
    for k in range(K):
        out = out + jnp.einsum('ncl,oc->nol', xp[:, :, k:k + L], wq[:, :, k])
    out = out + b[None, :, None].astype(jnp.float32)
    out = jnp.maximum(out, 0.0)
    Lout = L // pool_size
    out = out[:, :, :Lout * pool_size].reshape(N, Cout, Lout, pool_size).max(-1)
    return out


if __name__ == "__main__":
    # Module hyperparameters (small, consistent with ConvBlock's forward):
    N, Cin, Cout, L, K, P = 2, 4, 8, 16, 3, 2
    dropout = 0.1  # inert (eval mode)

    key = jax.random.PRNGKey(0)
    kx, kw, kb = jax.random.split(key, 3)
    x = jax.random.normal(kx, (N, Cin, L), dtype=jnp.float32)

    # Deterministic synthetic parameter init (Conv1d-like uniform fan-in scaling).
    fan_in = Cin * K
    bound = 1.0 / np.sqrt(fan_in)
    w = jax.random.uniform(kw, (Cout, Cin, K), jnp.float32, -bound, bound)
    b = jax.random.uniform(kb, (Cout,), jnp.float32, -bound, bound)

    out = conv_block_forward(x, w, b, pool_size=P)
    out = jax.block_until_ready(out)

    ref = ref_conv_block(x, w, b, P)
    np.testing.assert_allclose(np.asarray(out), np.asarray(ref),
                               rtol=1e-4, atol=1e-4)
    print("KERNEL_OK")
</pallas_src>

<mosaic_0001>
module attributes {stable_mosaic.version = 11 : i64} {
  func.func @conv_block_kernel(%arg0: i32, %arg1: memref<16x4xbf16, #tpu.memory_space<vmem>>, %arg2: memref<3x4x8xbf16, #tpu.memory_space<vmem>>, %arg3: memref<1x8xf32, #tpu.memory_space<vmem>>, %arg4: memref<8x8xf32, #tpu.memory_space<vmem>>, %arg5: memref<16x8xf32, #tpu.memory_space<vmem>>) attributes {dimension_semantics = [#tpu.dimension_semantics<parallel>], iteration_bounds = array<i64: 2>, scalar_prefetch = 0 : i64, scratch_operands = 1 : i64, tpu.core_type = #tpu.core_type<tc>, window_params = [{transform_indices = @transform_0, window_bounds = array<i64: 16, 4>}, {pipeline_mode = #tpu.pipeline_mode<synchronous>, transform_indices = @transform_1, window_bounds = array<i64: 3, 4, 8>}, {pipeline_mode = #tpu.pipeline_mode<synchronous>, transform_indices = @transform_2, window_bounds = array<i64: 1, 8>}, {transform_indices = @transform_3, window_bounds = array<i64: 8, 8>}]} {
    %c0 = arith.constant 0 : index
    %c0_0 = arith.constant 0 : index
    %0 = vector.load %arg1[%c0, %c0_0] : memref<16x4xbf16, #tpu.memory_space<vmem>>, vector<16x4xbf16>
    %1 = tpu.iota {dimensions = array<i32: 0>} : vector<16x1xi32>
    %c16_i32 = arith.constant 16 : i32
    %c0_i32 = arith.constant 0 : i32
    %2 = arith.cmpi eq, %c16_i32, %c0_i32 : i32
    %c1_i32 = arith.constant 1 : i32
    %3 = arith.select %2, %c1_i32, %c16_i32 : i32
    %4 = vector.broadcast %3 : i32 to vector<16x1xi32>
    %5 = arith.remsi %1, %4 : vector<16x1xi32>
    %c0_i32_1 = arith.constant 0 : i32
    %6 = vector.broadcast %c0_i32_1 : i32 to vector<16x1xi32>
    %7 = arith.cmpi ne, %5, %6 : vector<16x1xi32>
    %c0_i32_2 = arith.constant 0 : i32
    %8 = vector.broadcast %c0_i32_2 : i32 to vector<16x1xi32>
    %9 = arith.cmpi slt, %5, %8 : vector<16x1xi32>
    %c0_i32_3 = arith.constant 0 : i32
    %10 = arith.cmpi slt, %3, %c0_i32_3 : i32
    %11 = vector.broadcast %10 : i1 to vector<16x1xi1>
    %12 = vector.broadcast %11 : vector<16x1xi1> to vector<16x1xi1>
    %13 = arith.xori %9, %12 : vector<16x1xi1>
    %14 = arith.andi %13, %7 : vector<16x1xi1>
    %15 = vector.broadcast %3 : i32 to vector<16x1xi32>
    %16 = arith.addi %5, %15 : vector<16x1xi32>
    %17 = arith.select %14, %16, %5 : vector<16x1xi1>, vector<16x1xi32>
    %cst = arith.constant 0.000000e+00 : f32
    %18 = vector.broadcast %cst : f32 to vector<16x8xf32>
    %c0_4 = arith.constant 0 : index
    %c0_5 = arith.constant 0 : index
    %c0_6 = arith.constant 0 : index
    %19 = vector.load %arg2[%c0_4, %c0_5, %c0_6] : memref<3x4x8xbf16, #tpu.memory_space<vmem>>, vector<1x4x8xbf16>
    %20 = vector.shape_cast %19 : vector<1x4x8xbf16> to vector<4x8xbf16>
    %cst_7 = arith.constant dense<0.000000e+00> : vector<16x8xf32>
    %21 = tpu.matmul %0, %20, %cst_7 {dimension_numbers = #tpu.dot_dimension_numbers<[1], [0], [0], [1], [0, 0, 1, 1], [], []>} : vector<16x4xbf16>, vector<4x8xbf16>, vector<16x8xf32> -> vector<16x8xf32>
    %c1_i32_8 = arith.constant 1 : i32
    %22 = tpu.dynamic_rotate %21 by %c1_i32_8 dim 0 : vector<16x8xf32>, i32 -> vector<16x8xf32>
    %c1_i32_9 = arith.constant 1 : i32
    %23 = vector.broadcast %c1_i32_9 : i32 to vector<16x1xi32>
    %24 = arith.cmpi sge, %17, %23 : vector<16x1xi32>
    %cst_10 = arith.constant 0.000000e+00 : f32
    %25 = vector.shape_cast %24 : vector<16x1xi1> to vector<16x1xi1>
    %26 = vector.broadcast %25 : vector<16x1xi1> to vector<16x8xi1>
    %27 = vector.broadcast %cst_10 : f32 to vector<16x8xf32>
    %28 = arith.select %26, %22, %27 : vector<16x8xi1>, vector<16x8xf32>
    %29 = arith.addf %18, %28 : vector<16x8xf32>
    %c1 = arith.constant 1 : index
    %c0_11 = arith.constant 0 : index
    %c0_12 = arith.constant 0 : index
    %30 = vector.load %arg2[%c1, %c0_11, %c0_12] : memref<3x4x8xbf16, #tpu.memory_space<vmem>>, vector<1x4x8xbf16>
    %31 = vector.shape_cast %30 : vector<1x4x8xbf16> to vector<4x8xbf16>
    %cst_13 = arith.constant dense<0.000000e+00> : vector<16x8xf32>
    %32 = tpu.matmul %0, %31, %cst_13 {dimension_numbers = #tpu.dot_dimension_numbers<[1], [0], [0], [1], [0, 0, 1, 1], [], []>} : vector<16x4xbf16>, vector<4x8xbf16>, vector<16x8xf32> -> vector<16x8xf32>
    %33 = arith.addf %29, %32 : vector<16x8xf32>
    %c2 = arith.constant 2 : index
    %c0_14 = arith.constant 0 : index
    %c0_15 = arith.constant 0 : index
    %34 = vector.load %arg2[%c2, %c0_14, %c0_15] : memref<3x4x8xbf16, #tpu.memory_space<vmem>>, vector<1x4x8xbf16>
    %35 = vector.shape_cast %34 : vector<1x4x8xbf16> to vector<4x8xbf16>
    %cst_16 = arith.constant dense<0.000000e+00> : vector<16x8xf32>
    %36 = tpu.matmul %0, %35, %cst_16 {dimension_numbers = #tpu.dot_dimension_numbers<[1], [0], [0], [1], [0, 0, 1, 1], [], []>} : vector<16x4xbf16>, vector<4x8xbf16>, vector<16x8xf32> -> vector<16x8xf32>
    %c15_i32 = arith.constant 15 : i32
    %37 = tpu.dynamic_rotate %36 by %c15_i32 dim 0 : vector<16x8xf32>, i32 -> vector<16x8xf32>
    %c15_i32_17 = arith.constant 15 : i32
    %38 = vector.broadcast %c15_i32_17 : i32 to vector<16x1xi32>
    %39 = arith.cmpi slt, %17, %38 : vector<16x1xi32>
    %cst_18 = arith.constant 0.000000e+00 : f32
    %40 = vector.shape_cast %39 : vector<16x1xi1> to vector<16x1xi1>
    %41 = vector.broadcast %40 : vector<16x1xi1> to vector<16x8xi1>
    %42 = vector.broadcast %cst_18 : f32 to vector<16x8xf32>
    %43 = arith.select %41, %37, %42 : vector<16x8xi1>, vector<16x8xf32>
    %44 = arith.addf %33, %43 : vector<16x8xf32>
    %c0_19 = arith.constant 0 : index
    %c0_20 = arith.constant 0 : index
    %45 = vector.load %arg3[%c0_19, %c0_20] : memref<1x8xf32, #tpu.memory_space<vmem>>, vector<1x8xf32>
    %46 = vector.broadcast %45 : vector<1x8xf32> to vector<16x8xf32>
    %47 = arith.addf %44, %46 : vector<16x8xf32>
    %cst_21 = arith.constant 0.000000e+00 : f32
    %48 = vector.broadcast %cst_21 : f32 to vector<16x8xf32>
    %49 = arith.maximumf %47, %48 : vector<16x8xf32>
    %c0_22 = arith.constant 0 : index
    %c0_23 = arith.constant 0 : index
    %50 = vector.load %arg5[%c0_22, %c0_23] : memref<16x8xf32, #tpu.memory_space<vmem>>, vector<16x8xf32>
    tpu.vector_store %arg5[%c0_22, %c0_23], %49 {strides = array<i32>} : memref<16x8xf32, #tpu.memory_space<vmem>>, vector<16x8xf32>,
    %c0_24 = arith.constant 0 : index
    %c0_25 = arith.constant 0 : index
    %51 = tpu.strided_load %arg5[%c0_24, %c0_25] {strides = array<i32: 2, 1>} : memref<16x8xf32, #tpu.memory_space<vmem>>, vector<8x8xf32>
    %c1_26 = arith.constant 1 : index
    %c0_27 = arith.constant 0 : index
    %52 = tpu.strided_load %arg5[%c1_26, %c0_27] {strides = array<i32: 2, 1>} : memref<16x8xf32, #tpu.memory_space<vmem>>, vector<8x8xf32>
    %53 = arith.maximumf %51, %52 : vector<8x8xf32>
    %c0_28 = arith.constant 0 : index
    %c0_29 = arith.constant 0 : index
    %54 = vector.load %arg4[%c0_28, %c0_29] : memref<8x8xf32, #tpu.memory_space<vmem>>, vector<8x8xf32>
    tpu.vector_store %arg4[%c0_28, %c0_29], %53 {strides = array<i32>} : memref<8x8xf32, #tpu.memory_space<vmem>>, vector<8x8xf32>,
    return
  }
  func.func @transform_0(%arg0: i32) -> (i32, i32) {
    %c0_i32 = arith.constant 0 : i32
    %c0_i32_0 = arith.constant 0 : i32
    return %arg0, %c0_i32 : i32, i32
  }
  func.func @transform_1(%arg0: i32) -> (i32, i32, i32) {
    %c0_i32 = arith.constant 0 : i32
    %c0_i32_0 = arith.constant 0 : i32
    %c0_i32_1 = arith.constant 0 : i32
    %c0_i32_2 = arith.constant 0 : i32
    return %c0_i32, %c0_i32_0, %c0_i32_1 : i32, i32, i32
  }
  func.func @transform_2(%arg0: i32) -> (i32, i32) {
    %c0_i32 = arith.constant 0 : i32
    %c0_i32_0 = arith.constant 0 : i32
    %c0_i32_1 = arith.constant 0 : i32
    return %c0_i32, %c0_i32_0 : i32, i32
  }
  func.func @transform_3(%arg0: i32) -> (i32, i32) {
    %c0_i32 = arith.constant 0 : i32
    %c0_i32_0 = arith.constant 0 : i32
    return %arg0, %c0_i32 : i32, i32
  }
}

</mosaic_0001>

<bundles_post_ra>
// kernel: tpu_custom_call.1
= control target key start
LH: loop header
LB: loop body
LE: loop exit
PB: predicated region body
PF: predicated region fallthrough
CT: control target
= control target key end

     0   :  { %s534_s12 = smov 0   ;;  %s574_s0 = inlined_call_operand.vmem [shape: bf16[32,4], index: 0, kind: input, shape index: {}]   ;;  %s575_s1 = inlined_call_operand.vmem [shape: bf16[3,4,8], index: 1, kind: input, shape index: {}]   ;;  %s576_s2 = inlined_call_operand.vmem [shape: f32[1,8], index: 2, kind: input, shape index: {}]   ;;  %s577_s3 = inlined_call_operand.vmem [shape: f32[16,8], index: 3, kind: output, shape index: {}]  }
   0x1 LB: > { %s540_s13 = sadd.s32 4294967295, %s510_s12   ;;  %p456_p0 = scmp.ge.s32.totalorder %s510_s12, 1  ;;  %s510_s12 = sphi %s534_s12, %s13_s12  }
   0x2   : > { %p138_p1 = scmp.lt.s32.totalorder %s510_s12, 3 }
   0x4   : > { %p139_p2 = pnand %p456_p0, %p138_p1 }
   0x5   : > { %v201_v0 = vld [vmem:[%s575_s1] sm:$0x3] (!%p139_p2)  ;;  %vm211_vm0 = vcmask (!%p139_p2), 1041408   ;;  %s457_s16 = sshll.u32 (!%p139_p2), %s540_s13, 1  ;;  %v512_v1 = vmov (!%p139_p2), 0.0   ;;  %vm513_vm1 = vmmov (!%p139_p2), 0   ;;  %v174_v8 = vlaneseq (!%p139_p2) }
   0x6   : > { %142 = sbr.rel (%p139_p2) target bundleno = 260 (0x104), region = 32  ;;  %475 = vmatprep.subr.bf16.mxu0 (!%p139_p2), %v512_v1  ;;  %v213_v2 = vsel (!%p139_p2), %vm211_vm0, %v201_v0, 0  ;;  %477 = vmatprep.mubr.msk.bf16.mxu0 (!%p139_p2), %vm513_vm1, %v512_v1  ;;  %p162_p3 = scmp.lt.s32.totalorder (!%p139_p2), %s457_s16, 3  ;;  %v462_v3 = vld [vmem:[%s575_s1 + $0x2] sm:$0x3] (!%p139_p2)  ;;  %vm207_vm2 = vcmask (!%p139_p2), 31744  }
   0x7   : > { %476 = vmatpush3.bf16.msra.mxu0 (!%p139_p2), %v213_v2  ;;  %481 = vmatprep.subr.bf16.mxu1 (!%p139_p2), %v512_v1  ;;  %v274_v4 = vsel (!%p139_p2), %vm211_vm0, %v462_v3, 0  ;;  %v464_v5 = vld [vmem:[%s575_s1 + $0x4] sm:$0x3] (!%p139_p2)  ;;  %v175_v9 = vshrl.u32 (!%p139_p2), %v174_v8, 7  ;;  %v466_v36 = vld [vmem:[%s576_s2] ss:$0 sm:$0xff] (!%p139_p2) }
   0x8   : > { %487 = vmatprep.subr.bf16.mxu0 (!%p139_p2), %v512_v1  ;;  %482 = vmatpush3.bf16.msra.mxu1 (!%p139_p2), %v274_v4  ;;  %v322_v7 = vsel (!%p139_p2), %vm211_vm0, %v464_v5, 0  ;;  %p167_p4 = scmp.lt.s32.totalorder (!%p139_p2), %s540_s13, 1  ;;  %vm391_vm7 = vcmask (!%p139_p2), 64512  }
   0x9   : > { %483 = vmatprep.mubr.msk.bf16.mxu1 (!%p139_p2), %vm513_vm1, %v512_v1  ;;  %v181_v10 = vand.u32 (!%p139_p2), 15, %v175_v9  ;;  %vm258_vm3 = vcmp.lt.s32.totalorder (!%p139_p2), %v175_v9, 1  ;;  %v176_v21 = vadd.s32 (!%p139_p2), 8, %v175_v9  ;;  %vm367_vm5 = vcmp.lt.s32.totalorder (!%p139_p2), %v175_v9, 7 }
   0xb   : > { %vm261_vm4 = vcmp.ge.s32.totalorder (!%p139_p2), %v181_v10, 1  ;;  %v188_v27 = vand.u32 (!%p139_p2), 15, %v176_v21 }
   0xd   : > { %s579_s16 = smov (!%p162_p3, %s457_s16), 3  ;;  %vm371_vm6 = vcmp.lt.s32.totalorder %v188_v27, 15  ;;  %s581_s13 = smov (!%p167_p4, %s540_s13), 1 }
   0xe   : > { %s458_s21 = sshll.u32 %s579_s16, 2  ;;  %s459_s27 = sshll.u32 %s581_s13, 3 }
   0xf   : > { %s165_s24 = scalar_lea.vmem %s574_s0, %s458_s21  ;;  %s170_s30 = scalar_lea.vmem %s577_s3, %s459_s27 }
  0x10   : > { %v503_v6 = vld [vmem:[%s165_s24] sm:$0xff]  }
  0x11   : > { %478 = vmatmul.mubr.msk.bf16.vlgmr.msra.gmra.mrb[0].mxu0 %vm207_vm2, %v503_v6  ;;  %484 = vmatmul.mubr.msk.bf16.vlgmr.msra.gmra.mrb[0].mxu1 %vm207_vm2, %v503_v6 }
  0x12   : > { %488 = vmatpush3.bf16.msra.mxu0 %v322_v7  ;;  %489 = vmatprep.mubr.msk.bf16.mxu0 %vm513_vm1, %v512_v1 }
  0x19   : > { %490 = vmatmul.mubr.msk.bf16.vlgmr.msra.gmra.mrb[4].mxu0 %vm207_vm2, %v503_v6 }
  0xe4   : > { %v249_v11 = vpop.f32.mrb[0].mxu0  ;;  %v310_v12 = vpop.f32.mrb[0].mxu1 }
  0xe5   : > { %v479_v13 = vpop.f32.mrb[1].mxu0  ;;  %v485_v14 = vpop.f32.mrb[1].mxu1  ;;  %v256_v17 = vrot.slane %v249_v11, 7 }
  0xe6   : > { %v252_v15 = vpop.f32.mrb[2].mxu0  ;;  %v313_v16 = vpop.f32.mrb[2].mxu1 }
  0xe7   : > { %v257_v18 = vrot.slane %v252_v15, 7  ;;  %v480_v19 = vpop.f32.mrb[3].mxu0  ;;  %v486_v20 = vpop.f32.mrb[3].mxu1 }
  0xe9   : > { %v260_v22 = vsel %vm258_vm3, %v257_v18, %v256_v17  ;;  %v259_v23 = vsel %vm258_vm3, %v256_v17, %v257_v18 }
  0xea   : > { %v267_v24 = vsel %vm261_vm4, %v260_v22, 0.0  ;;  %v318_v25 = vadd.f32 %v313_v16, %v259_v23 }
  0xeb   : > { %v317_v26 = vadd.f32 %v310_v12, %v267_v24 }
  0xec   : > { %v358_v28 = vpop.f32.mrb[4].mxu0 }
  0xed   : > { %v491_v29 = vpop.f32.mrb[5].mxu0  ;;  %v365_v31 = vrot.slane %v358_v28, 1 }
  0xee   : > { %v361_v30 = vpop.f32.mrb[6].mxu0 }
  0xef   : > { %v366_v32 = vrot.slane %v361_v30, 1  ;;  %v492_v33 = vpop.f32.mrb[7].mxu0 }
  0xf1   : > { %v368_v34 = vsel %vm367_vm5, %v365_v31, %v366_v32  ;;  %v369_v35 = vsel %vm367_vm5, %v366_v32, %v365_v31 }
  0xf2   : > { %v377_v37 = vsel %vm371_vm6, %v369_v35, 0.0  ;;  %v378_v38 = vadd.f32 %v368_v34, %v317_v26 }
  0xf3   : > { %v379_v39 = vadd.f32 %v377_v37, %v318_v25 }
  0xf4   : > { %v387_v40 = vadd.f32 %v466_v36, %v378_v38 }
  0xf5   : > { %v388_v41 = vadd.f32 %v466_v36, %v379_v39 }
  0xf6   : > { %v389_v42 = vmax.f32 %v387_v40, 0.0 }
  0xf7   : > { %v390_v43 = vmax.f32 %v388_v41, 0.0 }
  0xf8   : > { %392 = vst.msk [vmem:[#allocation2] sm:$0xff] %vm391_vm7, %v389_v42 }
  0xf9   : > { %393 = vst.msk [vmem:[#allocation2 + $0x8] sm:$0xff] %vm391_vm7, %v390_v43 }
 0x100   : > { %v394_v44 = vld [vmem:[#allocation2] ss:$2 sm:$0xff]  ;;  %v396_v45 = vld [vmem:[#allocation2 + $0x1] ss:$2 sm:$0xff] }
 0x101   : > { %v397_v46 = vmax.f32 %v394_v44, %v396_v45 }
 0x103   : > { %398 = vst.msk [vmem:[%s170_s30] sm:$0xff] %vm391_vm7, %v397_v46 }
 0x104 PF: > { %s13_s12 = sadd.s32 1, %s510_s12  }
 0x105   : > { %p10_p5 = scmp.ge.s32.totalorder %s13_s12, 4  }
 0x107   :  { %12 = sbr.rel (!%p10_p5) target bundleno = 1 (0x1), region = 65 }

</bundles_post_ra>
